<compile_context>
chip_gen: v6e
topology: v6e:2x2x1
jax: 0.10.0
libtpu: 0.0.40
codegen_flags: <defaults>
</compile_context>

<pallas_src>
import functools

import jax
import jax.numpy as jnp
from jax.experimental import pallas as pl
from jax.experimental.pallas import tpu as pltpu


def _round_up(x, m):
    return (x + m - 1) // m * m


def encoder_kernel(x_ref, w1_ref, b1_ref, wh_ref, bh_ref, out_ref):
    # Stage 1: hidden = relu(x @ W1 + b1)
    #   bf16 MXU matmul with f32 accumulation; bias + ReLU in f32 on the VPU
    #   (safe on v5e, which has no bf16 VPU).
    x = x_ref[...].astype(jnp.bfloat16)                       # (tm, in_feat)
    h = jnp.dot(x, w1_ref[...], preferred_element_type=jnp.float32)
    h = jnp.maximum(h + b1_ref[...], 0.0)                     # (tm, H_pad) f32

    # Stage 2: fused head  [mean | log_var] = hidden @ [Wmu|Wvar] + [bmu|bvar]
    #   One MXU pass, one lane-dense bf16 store.
    out = jnp.dot(h.astype(jnp.bfloat16), wh_ref[...],
                  preferred_element_type=jnp.float32)
    out_ref[...] = (out + bh_ref[...]).astype(jnp.bfloat16)   # (tm, OUT_pad)


def pack_params(params):
    """Pack raw (already (in,out)-transposed) f32 params into the padded /
    fused bf16 form the kernel consumes.  Called once, outside the hot path."""
    w1, b1, wmu, bmu, wvar, bvar = params
    in_feat, hidden_dim = w1.shape
    latent_dim = wmu.shape[1]

    h_pad = _round_up(hidden_dim, 128)
    out_pad = _round_up(2 * latent_dim, 128)

    # W1: only the *output* (lane) dim is padded; contraction dim stays at
    # in_feat so the unpadded x can be consumed directly.
    w1_p = (jnp.zeros((in_feat, h_pad), jnp.bfloat16)
            .at[:, :hidden_dim].set(w1.astype(jnp.bfloat16)))
    b1_p = jnp.zeros((1, h_pad), jnp.float32).at[:, :hidden_dim].set(b1)

    wh = jnp.concatenate([wmu, wvar], axis=1)                 # (hidden, 2L)
    bh = jnp.concatenate([bmu, bvar], axis=1)                 # (1, 2L)
    wh_p = (jnp.zeros((h_pad, out_pad), jnp.bfloat16)
            .at[:hidden_dim, :2 * latent_dim].set(wh.astype(jnp.bfloat16)))
    bh_p = jnp.zeros((1, out_pad), jnp.float32).at[:, :2 * latent_dim].set(bh)

    return (w1_p, b1_p, wh_p, bh_p)


@functools.partial(jax.jit, static_argnames=("latent_dim",))
def encoder_forward(x, packed, latent_dim):
    """x: (B, input_dim + n_classes) float32. Returns (mean, log_var) f32."""
    w1_p, b1_p, wh_p, bh_p = packed
    B, in_feat = x.shape
    h_pad = w1_p.shape[1]
    out_pad = wh_p.shape[1]

    # Batch tile: ~B/2 (rounded to 16 for bf16 output sublane packing) so the
    # grid has >=2 programs on realistic batches (v7x megacore sharding),
    # capped at 1024 rows; never larger than the (8-rounded) batch itself so
    # tiny batches need no padding at all.
    tm = min(max(16, min(1024, _round_up(pl.cdiv(B, 2), 16))),
             _round_up(B, 8))
    b_pad = _round_up(B, tm)

    # Only pad the batch dim, only when needed (no dtype cast, no feature pad).
    if b_pad == B:
        x_in = x
    else:
        x_in = jnp.zeros((b_pad, in_feat), x.dtype).at[:B, :].set(x)

    grid = (b_pad // tm,)

    # Advisory cost estimate (keeps XLA's scheduler honest around the call).
    flops = 2 * b_pad * (in_feat * h_pad + h_pad * out_pad)
    bytes_accessed = (b_pad * in_feat * 4          # x (f32 in)
                      + w1_p.size * 2 + wh_p.size * 2
                      + b1_p.size * 4 + bh_p.size * 4
                      + b_pad * out_pad * 2)       # out (bf16)

    # VMEM budget: double-buffered x / out tiles, resident weights & biases,
    # h intermediate (f32 + bf16 cast copy) and the f32 head accumulator,
    # with 2x headroom.  Tiny vs. the 64 MiB v7x floor.
    vmem_bytes = (2 * tm * in_feat * 4
                  + 2 * tm * out_pad * 2
                  + 2 * (in_feat * h_pad * 2 + h_pad * out_pad * 2)
                  + 2 * (h_pad + out_pad) * 4
                  + tm * h_pad * 4 + tm * h_pad * 2
                  + tm * out_pad * 4)
    vmem_limit = int(min(max(2 * vmem_bytes, 8 << 20), 48 << 20))

    out = pl.pallas_call(
        encoder_kernel,
        out_shape=jax.ShapeDtypeStruct((b_pad, out_pad), jnp.bfloat16),
        grid_spec=pltpu.PrefetchScalarGridSpec(
            num_scalar_prefetch=0,
            grid=grid,
            in_specs=[
                pl.BlockSpec((tm, in_feat), lambda i: (i, 0)),       # x tile
                pl.BlockSpec((in_feat, h_pad), lambda i: (0, 0)),    # W1 (resident)
                pl.BlockSpec((1, h_pad), lambda i: (0, 0)),          # b1
                pl.BlockSpec((h_pad, out_pad), lambda i: (0, 0)),    # [Wmu|Wvar]
                pl.BlockSpec((1, out_pad), lambda i: (0, 0)),        # [bmu|bvar]
            ],
            out_specs=pl.BlockSpec((tm, out_pad), lambda i: (i, 0)),
        ),
        compiler_params=pltpu.CompilerParams(
            dimension_semantics=("parallel",),
            vmem_limit_bytes=vmem_limit,
        ),
        cost_estimate=pl.CostEstimate(
            flops=flops, transcendentals=0, bytes_accessed=bytes_accessed),
    )(x_in, w1_p, b1_p, wh_p, bh_p)

    # Single contiguous slice of the padded slab, then split the tiny result.
    head = out[:B, :2 * latent_dim].astype(jnp.float32)
    mean = head[:, :latent_dim]
    log_var = head[:, latent_dim:]
    return mean, log_var


def init_params(key, input_dim, hidden_dim, latent_dim, n_classes):
    """Deterministic synthetic parameters (same shapes as the nn.Linear's),
    stored already-transposed as (in_features, out_features)."""
    in_feat = input_dim + n_classes
    ks = jax.random.split(key, 6)
    scale1 = 1.0 / jnp.sqrt(in_feat)
    scale2 = 1.0 / jnp.sqrt(hidden_dim)
    w1 = jax.random.uniform(ks[0], (in_feat, hidden_dim), jnp.float32,
                            -scale1, scale1)
    b1 = jax.random.uniform(ks[1], (1, hidden_dim), jnp.float32,
                            -scale1, scale1)
    wmu = jax.random.uniform(ks[2], (hidden_dim, latent_dim), jnp.float32,
                             -scale2, scale2)
    bmu = jax.random.uniform(ks[3], (1, latent_dim), jnp.float32,
                             -scale2, scale2)
    wvar = jax.random.uniform(ks[4], (hidden_dim, latent_dim), jnp.float32,
                              -scale2, scale2)
    bvar = jax.random.uniform(ks[5], (1, latent_dim), jnp.float32,
                              -scale2, scale2)
    return (w1, b1, wmu, bmu, wvar, bvar)


if __name__ == "__main__":
    # Small shapes consistent with the module's forward:
    #   input_dim=64, n_classes=10, hidden_dim=32, latent_dim=8, batch=8
    input_dim, hidden_dim, latent_dim, n_classes = 64, 32, 8, 10
    batch = 8

    key = jax.random.PRNGKey(0)
    k_x, k_p = jax.random.split(key)
    x = jax.random.normal(k_x, (batch, input_dim + n_classes), jnp.float32)
    params = init_params(k_p, input_dim, hidden_dim, latent_dim, n_classes)
    packed = pack_params(params)

    mean, log_var = encoder_forward(x, packed, latent_dim)
    jax.block_until_ready((mean, log_var))

    # Pure-JAX f32 reference of the same math (bf16 matmuls/store -> loose tol).
    w1, b1, wmu, bmu, wvar, bvar = params
    hidden_ref = jnp.maximum(x @ w1 + b1, 0.0)
    mean_ref = hidden_ref @ wmu + bmu
    logvar_ref = hidden_ref @ wvar + bvar

    assert mean.shape == (batch, latent_dim)
    assert log_var.shape == (batch, latent_dim)
    assert jnp.allclose(mean, mean_ref, atol=2e-2, rtol=2e-2)
    assert jnp.allclose(log_var, logvar_ref, atol=2e-2, rtol=2e-2)

    print("KERNEL_OK")
</pallas_src>

<mosaic_0001>
module attributes {stable_mosaic.version = 11 : i64} {
  func.func @encoder_kernel(%arg0: i32, %arg1: memref<8x74xf32, #tpu.memory_space<vmem>>, %arg2: memref<74x128xbf16, #tpu.memory_space<vmem>>, %arg3: memref<1x128xf32, #tpu.memory_space<vmem>>, %arg4: memref<128x128xbf16, #tpu.memory_space<vmem>>, %arg5: memref<1x128xf32, #tpu.memory_space<vmem>>, %arg6: memref<8x128xbf16, #tpu.memory_space<vmem>>) attributes {dimension_semantics = [#tpu.dimension_semantics<parallel>], iteration_bounds = array<i64: 1>, scalar_prefetch = 0 : i64, scratch_operands = 0 : i64, tpu.core_type = #tpu.core_type<tc>, window_params = [{transform_indices = @transform_0, window_bounds = array<i64: 8, 74>}, {pipeline_mode = #tpu.pipeline_mode<synchronous>, transform_indices = @transform_1, window_bounds = array<i64: 74, 128>}, {pipeline_mode = #tpu.pipeline_mode<synchronous>, transform_indices = @transform_2, window_bounds = array<i64: 1, 128>}, {pipeline_mode = #tpu.pipeline_mode<synchronous>, transform_indices = @transform_3, window_bounds = array<i64: 128, 128>}, {pipeline_mode = #tpu.pipeline_mode<synchronous>, transform_indices = @transform_4, window_bounds = array<i64: 1, 128>}, {transform_indices = @transform_5, window_bounds = array<i64: 8, 128>}]} {
    %c0 = arith.constant 0 : index
    %c0_0 = arith.constant 0 : index
    %0 = vector.load %arg1[%c0, %c0_0] : memref<8x74xf32, #tpu.memory_space<vmem>>, vector<8x74xf32>
    %1 = arith.truncf %0 : vector<8x74xf32> to vector<8x74xbf16>
    %c0_1 = arith.constant 0 : index
    %c0_2 = arith.constant 0 : index
    %2 = vector.load %arg2[%c0_1, %c0_2] : memref<74x128xbf16, #tpu.memory_space<vmem>>, vector<74x128xbf16>
    %cst = arith.constant dense<0.000000e+00> : vector<8x128xf32>
    %3 = tpu.matmul %1, %2, %cst {dimension_numbers = #tpu.dot_dimension_numbers<[1], [0], [0], [1], [0, 0, 1, 1], [], []>} : vector<8x74xbf16>, vector<74x128xbf16>, vector<8x128xf32> -> vector<8x128xf32>
    %c0_3 = arith.constant 0 : index
    %c0_4 = arith.constant 0 : index
    %4 = vector.load %arg3[%c0_3, %c0_4] : memref<1x128xf32, #tpu.memory_space<vmem>>, vector<1x128xf32>
    %5 = vector.broadcast %4 : vector<1x128xf32> to vector<8x128xf32>
    %6 = arith.addf %3, %5 : vector<8x128xf32>
    %cst_5 = arith.constant 0.000000e+00 : f32
    %7 = vector.broadcast %cst_5 : f32 to vector<8x128xf32>
    %8 = arith.maximumf %6, %7 : vector<8x128xf32>
    %9 = arith.truncf %8 : vector<8x128xf32> to vector<8x128xbf16>
    %c0_6 = arith.constant 0 : index
    %c0_7 = arith.constant 0 : index
    %10 = vector.load %arg4[%c0_6, %c0_7] : memref<128x128xbf16, #tpu.memory_space<vmem>>, vector<128x128xbf16>
    %cst_8 = arith.constant dense<0.000000e+00> : vector<8x128xf32>
    %11 = tpu.matmul %9, %10, %cst_8 {dimension_numbers = #tpu.dot_dimension_numbers<[1], [0], [0], [1], [0, 0, 1, 1], [], []>} : vector<8x128xbf16>, vector<128x128xbf16>, vector<8x128xf32> -> vector<8x128xf32>
    %c0_9 = arith.constant 0 : index
    %c0_10 = arith.constant 0 : index
    %12 = vector.load %arg5[%c0_9, %c0_10] : memref<1x128xf32, #tpu.memory_space<vmem>>, vector<1x128xf32>
    %13 = vector.broadcast %12 : vector<1x128xf32> to vector<8x128xf32>
    %14 = arith.addf %11, %13 : vector<8x128xf32>
    %15 = arith.truncf %14 : vector<8x128xf32> to vector<8x128xbf16>
    %c0_11 = arith.constant 0 : index
    %c0_12 = arith.constant 0 : index
    %16 = vector.load %arg6[%c0_11, %c0_12] : memref<8x128xbf16, #tpu.memory_space<vmem>>, vector<8x128xbf16>
    tpu.vector_store %arg6[%c0_11, %c0_12], %15 {strides = array<i32>} : memref<8x128xbf16, #tpu.memory_space<vmem>>, vector<8x128xbf16>,
    return
  }
  func.func @transform_0(%arg0: i32) -> (i32, i32) {
    %c0_i32 = arith.constant 0 : i32
    %c0_i32_0 = arith.constant 0 : i32
    return %arg0, %c0_i32 : i32, i32
  }
  func.func @transform_1(%arg0: i32) -> (i32, i32) {
    %c0_i32 = arith.constant 0 : i32
    %c0_i32_0 = arith.constant 0 : i32
    %c0_i32_1 = arith.constant 0 : i32
    return %c0_i32, %c0_i32_0 : i32, i32
  }
  func.func @transform_2(%arg0: i32) -> (i32, i32) {
    %c0_i32 = arith.constant 0 : i32
    %c0_i32_0 = arith.constant 0 : i32
    %c0_i32_1 = arith.constant 0 : i32
    return %c0_i32, %c0_i32_0 : i32, i32
  }
  func.func @transform_3(%arg0: i32) -> (i32, i32) {
    %c0_i32 = arith.constant 0 : i32
    %c0_i32_0 = arith.constant 0 : i32
    %c0_i32_1 = arith.constant 0 : i32
    return %c0_i32, %c0_i32_0 : i32, i32
  }
  func.func @transform_4(%arg0: i32) -> (i32, i32) {
    %c0_i32 = arith.constant 0 : i32
    %c0_i32_0 = arith.constant 0 : i32
    %c0_i32_1 = arith.constant 0 : i32
    return %c0_i32, %c0_i32_0 : i32, i32
  }
  func.func @transform_5(%arg0: i32) -> (i32, i32) {
    %c0_i32 = arith.constant 0 : i32
    %c0_i32_0 = arith.constant 0 : i32
    return %arg0, %c0_i32 : i32, i32
  }
}

</mosaic_0001>

<bundles_post_ra>
// kernel: encoder_forward.1
= control target key start
LH: loop header
LB: loop body
LE: loop exit
PB: predicated region body
PF: predicated region fallthrough
CT: control target
= control target key end

     0   :  { %10 = vsyncpa [#allocation3], 0  ;;  %s481_s0 = inlined_call_operand.hbm [shape: f32[8,74], index: 0, kind: input, shape index: {}]   ;;  %s482_s1 = inlined_call_operand.hbm [shape: bf16[74,128], index: 1, kind: input, shape index: {}]   ;;  %s483_s2 = inlined_call_operand.vmem [shape: f32[1,128], index: 2, kind: input, shape index: {}]   ;;  %s484_s3 = inlined_call_operand.hbm [shape: bf16[128,128], index: 3, kind: input, shape index: {}]   ;;  %s485_s4 = inlined_call_operand.vmem [shape: f32[1,128], index: 4, kind: input, shape index: {}]   ;;  %s486_s5 = inlined_call_operand.vmem [shape: bf16[8,128], index: 5, kind: output, shape index: {}]  }
   0x1   :  { %11 = vsyncpa [#allocation5], 0  ;;  %s426_s18 = smov [#allocation4]  }
   0x2   :  { %s27_s19 = sshll.u32 %s426_s18, 4  ;;  %s28_s19 = int_to_ptr.vmem [resolvable:$true] %s27_s19 }
   0x3   :  { %s370_s20 = scalar_lea.vmem %s28_s19, 640  ;;  %p375_p1 = scmp.lt.s32.totalorder %s28_s19, %s28_s19 }
   0x4   :  { %p371_p0 = scmp.ne.s32.totalorder %s28_s19, %s370_s20  ;;  %p376_p2 = scmp.lt.s32.totalorder %s370_s20, %s370_s20 }
   0x6   :  { %p377_p3 = por %p376_p2, %p375_p1 }
   0x8   :  { %p378_p4 = pnand %p377_p3, %p371_p0 }
   0xa   :  { %381 = shalt.err (!%p378_p4)
}
   0xb   :  { %s427_s21 = smov 64   ;;  %s428_s22 = smov 4  }
   0xc   :  { %33 = dma.hbm_to_vmem [thread:$0]  %s482_s1, 640, %s28_s19, [#allocation5], %s427_s21, %s427_s21, %s428_s22  }
   0xd   :  { %s429_s25 = smov [#allocation2]   ;;  %s430_s27 = smov [#allocation6]  }
   0xe   :  { %s18_s26 = sshll.u32 %s429_s25, 4  ;;  %s41_s28 = sshll.u32 %s430_s27, 4  ;;  %s19_s26 = int_to_ptr.vmem [resolvable:$true] %s18_s26  ;;  %s42_s28 = int_to_ptr.vmem [resolvable:$true] %s41_s28 }
   0xf   :  { %s390_s29 = scalar_lea.vmem %s19_s26, 128  ;;  %p395_p6 = scmp.lt.s32.totalorder %s19_s26, %s19_s26 }
  0x10   :  { %p391_p5 = scmp.ne.s32.totalorder %s19_s26, %s390_s29  ;;  %p396_p7 = scmp.lt.s32.totalorder %s390_s29, %s390_s29 }
  0x12   :  { %p397_p8 = por %p396_p7, %p395_p6 }
  0x14   :  { %p398_p9 = pnand %p397_p8, %p391_p5 }
  0x16   :  { %401 = shalt.err (!%p398_p9)
}
  0x17   :  { %21 = dma.hbm_to_vmem [thread:$0]  %s481_s0, 128, %s19_s26, [#allocation3]  }
  0x18   :  { %s410_s7 = scalar_lea.vmem %s42_s28, 1024  ;;  %p415_p11 = scmp.lt.s32.totalorder %s42_s28, %s42_s28 }
  0x19   :  { %p411_p10 = scmp.ne.s32.totalorder %s42_s28, %s410_s7  ;;  %p416_p12 = scmp.lt.s32.totalorder %s410_s7, %s410_s7 }
  0x1b   :  { %p417_p13 = por %p416_p12, %p415_p11 }
  0x1d   :  { %p418_p0 = pnand %p417_p13, %p411_p10 }
  0x1f   :  { %421 = shalt.err (!%p418_p0)
}
  0x20   :  { %47 = dma.hbm_to_vmem [thread:$0]  %s484_s3, 1024, %s42_s28, [#allocation5], %s427_s21, %s427_s21, %s428_s22  }
  0x21   :  { %422 = dma.done.wait [#allocation3], 128  }
  0x22   :  { %423 = vsyncadd [#allocation3], 4294967168 }
  0x23   :  { %424 = dma.done.wait [#allocation5], 1664  }
  0x24   :  { %425 = vsyncadd [#allocation5], 4294965632  ;;  %v431_v0 = vmov 0.0   ;;  %vm432_vm0 = vmmov 0   ;;  %vm112_vm1 = vcmask 1044480   ;;  %v350_v3 = vld [vmem:[#allocation4 + $0x18] sm:$0xff]  }
  0x25   :  { %308 = vmatprep.subr.bf16.mxu0 %v431_v0  ;;  %318 = vmatprep.mubr.msk.bf16.mxu0 %vm432_vm0, %v431_v0  ;;  %v349_v1 = vld [vmem:[#allocation4 + $0x20] sm:$0x1f]   ;;  %v351_v5 = vld [vmem:[#allocation4 + $0x10] sm:$0xff]   ;;  %v355_v6 = vld [vmem:[#allocation6 + $0x30] sm:$0xff]   ;;  %vm108_vm2 = vcmask 605184  }
  0x26   :  { %322 = vmatprep.subr.bf16.mxu1 %v431_v0  ;;  %338 = vmatprep.mubr.msk.bf16.mxu1 %vm432_vm0, %v431_v0  ;;  %v114_v2 = vsel %vm112_vm1, %v349_v1, 0  ;;  %v354_v4 = vld [vmem:[#allocation6 + $0x38] sm:$0xff]   ;;  %v352_v7 = vld [vmem:[#allocation4 + $0x8] sm:$0xff]   ;;  %v356_v8 = vld [vmem:[#allocation6 + $0x28] sm:$0xff]  }
  0x27   :  { %309 = vmatpush3.bf16.msra.mxu0 %v114_v2  ;;  %323 = vmatpush3.bf16.msra.mxu1 %v354_v4  ;;  %v353_v9 = vld [vmem:[#allocation4] sm:$0xff]   ;;  %v60_v10 = vld [vmem:[#allocation2] sm:$0xff]  ;;  %v357_v11 = vld [vmem:[#allocation6 + $0x20] sm:$0xff]  }
  0x28   :  { %310 = vmatprep.subr.bf16.mxu0 %v431_v0  ;;  %324 = vmatprep.subr.bf16.mxu1 %v431_v0  ;;  %v61_v12 = vpack.c.bf16 %v60_v10, %v60_v10  ;;  %v358_v13 = vld [vmem:[#allocation6 + $0x18] sm:$0xff]   ;;  %v359_v14 = vld [vmem:[#allocation6 + $0x10] sm:$0xff]   ;;  %v360_v15 = vld [vmem:[#allocation6 + $0x8] sm:$0xff]  }
  0x29   :  { %v361_v16 = vld [vmem:[#allocation6] sm:$0xff]   ;;  %v277_v17 = vld [vmem:[%s483_s2] ss:$0 sm:$0xff] }
  0x2a   :  { %v284_v25 = vld [vmem:[%s485_s4] ss:$0 sm:$0xff] }
  0x2b   :  { %311 = vmatpush3.bf16.msra.mxu0 %v350_v3  ;;  %325 = vmatpush3.bf16.msra.mxu1 %v355_v6 }
  0x2c   :  { %312 = vmatprep.subr.bf16.mxu0 %v431_v0  ;;  %326 = vmatprep.subr.bf16.mxu1 %v431_v0 }
  0x2f   :  { %313 = vmatpush3.bf16.msra.mxu0 %v351_v5  ;;  %327 = vmatpush3.bf16.msra.mxu1 %v356_v8 }
  0x30   :  { %314 = vmatprep.subr.bf16.mxu0 %v431_v0  ;;  %328 = vmatprep.subr.bf16.mxu1 %v431_v0 }
  0x33   :  { %315 = vmatpush3.bf16.msra.mxu0 %v352_v7  ;;  %329 = vmatpush3.bf16.msra.mxu1 %v357_v11 }
  0x34   :  { %316 = vmatprep.subr.bf16.mxu0 %v431_v0  ;;  %330 = vmatprep.subr.bf16.mxu1 %v431_v0 }
  0x37   :  { %317 = vmatpush3.bf16.msra.mxu0 %v353_v9  ;;  %331 = vmatpush3.bf16.msra.mxu1 %v358_v13 }
  0x38   :  { %332 = vmatprep.subr.bf16.mxu1 %v431_v0 }
  0x3a   :  { %319 = vmatmul.mubr.msk.bf16.vlgmr.msra.gmra.mxu0 %vm108_vm2, %v61_v12 }
  0x3b   :  { %333 = vmatpush3.bf16.msra.mxu1 %v359_v14 }
  0x3c   :  { %334 = vmatprep.subr.bf16.mxu1 %v431_v0 }
  0x3f   :  { %335 = vmatpush3.bf16.msra.mxu1 %v360_v15 }
  0x40   :  { %336 = vmatprep.subr.bf16.mxu1 %v431_v0 }
  0x43   :  { %337 = vmatpush3.bf16.msra.mxu1 %v361_v16 }
  0xfa   :  { %v150_v18 = vpop.f32.mrf.mxu0 }
  0xfb   :  { %v151_v19 = vadd.f32 %v277_v17, %v150_v18 }
  0xfc   :  { %v320_v20 = vpop.f32.mrf.mxu0 }
  0xfd   :  { %v156_v21 = vmax.f32 %v151_v19, 0.0 }
  0xfe   :  { %v153_v22 = vpop.f32.mrf.mxu0 }
  0xff   :  { %v157_v23 = vpack.c.bf16 %v156_v21, %v156_v21 }
 0x100   :  { %v321_v24 = vpop.f32.mrf.mxu0 }
 0x101   :  { %339 = vmatmul.mubr.bf16.vlgmr.msra.gmra.mxu1 %v157_v23 }
 0x1c1   :  { %v263_v26 = vpop.f32.mrf.mxu1 }
 0x1c2   :  { %v264_v27 = vadd.f32 %v284_v25, %v263_v26 }
 0x1c3   :  { %v340_v28 = vpop.f32.mrf.mxu1 }
 0x1c4   :  { %v269_v29 = vpack.c.bf16 %v264_v27, %v264_v27 }
 0x1c5   :  { %v266_v30 = vpop.f32.mrf.mxu1 }
 0x1c6   :  { %270 = vst [vmem:[%s486_s5] sm:$0xf] %v269_v29 }
 0x1c7   :  { %v341_v31 = vpop.f32.mrf.mxu1 }
 0x1c8   :  { %275 = vsyncpa [#allocation3], 1 }
 0x1c9   :  { %276 = vsyncpa [#allocation5], 1 }

</bundles_post_ra>
